<compile_context>
chip_gen: v7x
topology: tpu7x:2x2x1
jax: 0.10.0
libtpu: 0.0.40
codegen_flags: <defaults>
</compile_context>

<pallas_src>
import functools

import jax
import jax.numpy as jnp
from jax.experimental import pallas as pl
from jax.experimental.pallas import tpu as pltpu


def _label_smoothing_kernel(target_ref, pred_ref, out_ref, *,
                            confidence, off_value, batch, tile_b):
    """One batch tile: log-softmax + smoothed cross entropy, per-row losses.

    target_ref: (B_pad, 1) int32 VMEM, untiled (constant block), sliced with pl.ds
    pred_ref  : (TILE_B, C) float VMEM block
    out_ref   : (TILE_B, 1) float32 VMEM block of per-row losses
    """
    i = pl.program_id(0)

    pf = pred_ref[...].astype(jnp.float32)                       # (TILE_B, C)
    tb, c = pf.shape

    # One pass for max, one for sum, one masked pass for the target entry and
    # one exp pass for the log-sum-exp.  `pf - m` only feeds the exp (EUP);
    # row reductions ride the XLU.
    m = jnp.max(pf, axis=-1, keepdims=True)                      # (TILE_B, 1)
    sum_pred = jnp.sum(pf, axis=-1, keepdims=True)               # (TILE_B, 1)
    lse = jnp.log(jnp.sum(jnp.exp(pf - m), axis=-1, keepdims=True))

    # Target indices for this tile, sliced from the untiled (B_pad, 1) array.
    start = pl.multiple_of(i * tile_b, tile_b)
    tgt = target_ref[pl.ds(start, tile_b), :]                    # (TILE_B, 1)

    # (1, C) class-index iota broadcast against (TILE_B, 1) targets — no
    # (TILE_B, C) int32 temporary is materialized.
    col = jax.lax.broadcasted_iota(jnp.int32, (1, c), 1)
    pred_at_tgt = jnp.sum(jnp.where(col == tgt, pf, 0.0),
                          axis=-1, keepdims=True)                # (TILE_B, 1)

    #   sum_c logp    = sum_c pred - C*m - C*lse
    #   logp[target]  = pred[target] - m - lse
    row_sum_logp = sum_pred - jnp.float32(c) * (m + lse)
    logp_at_tgt = pred_at_tgt - m - lse

    per_row = -(jnp.float32(off_value) * row_sum_logp
                + jnp.float32(confidence - off_value) * logp_at_tgt)

    # Zero padded rows of the last partial tile.  (Pallas clips the partial
    # output store anyway; the select also prevents NaNs from garbage rows.)
    row = jax.lax.broadcasted_iota(jnp.int32, (tb, 1), 0)
    per_row = jnp.where(i * tile_b + row < batch, per_row, 0.0)

    out_ref[...] = per_row


def _vmem_budget():
    """(per-tile f32 budget bytes, scoped vmem_limit_bytes) for this chip."""
    try:
        cap = pltpu.get_tpu_info().vmem_capacity_bytes
    except Exception:
        cap = 128 * 1024 * 1024
    if cap >= 100 * 1024 * 1024:           # v5e / v6e: 128 MiB VMEM
        return 12 * 1024 * 1024, 96 * 1024 * 1024
    # v7x: 64 MiB per TensorCore — keep clear headroom under the scoped limit.
    return 4 * 1024 * 1024, 40 * 1024 * 1024


def _choose_tile_b(batch, classes, itemsize, budget_bytes):
    """Largest sublane-friendly batch tile whose f32 working set fits budget."""
    tile = budget_bytes // max(classes * 4, 1)
    tile = int(min(max(tile, 8), 8192))        # per-step overhead amortizes well below this
    mult = 16 if itemsize < 4 else 8           # bf16 packs two rows per sublane
    tile -= tile % mult
    tile = max(tile, mult)
    if tile >= batch:
        return batch                           # single full-extent block
    return tile


def label_smoothing_loss(pred, target, *, classes, smoothing=0.0, tile_b=None):
    """pred: (B, C) float logits (f32 or bf16); target: (B,) or (B,1) int."""
    if pred.ndim != 2:
        raise ValueError("pred must be (batch, classes)")
    if pred.shape[1] != classes:
        raise ValueError(f"pred has {pred.shape[1]} classes, expected {classes}")
    if target.ndim == 1:
        target = target[:, None]
    target = target.astype(jnp.int32)

    batch = pred.shape[0]
    confidence = 1.0 - float(smoothing)
    # Guard classes == 1 (the PyTorch module would divide by zero here).
    off_value = float(smoothing) / (classes - 1) if classes > 1 else 0.0

    budget_bytes, vmem_limit = _vmem_budget()
    if tile_b is None:
        tile_b = _choose_tile_b(batch, classes, pred.dtype.itemsize, budget_bytes)
    tile_b = int(min(tile_b, batch))
    mult = 16 if pred.dtype.itemsize < 4 else 8
    if tile_b != batch and tile_b % mult != 0:
        raise ValueError(
            f"tile_b must be a multiple of {mult} for dtype {pred.dtype} "
            "(or equal to batch)")

    num_tiles = pl.cdiv(batch, tile_b)

    # Pad the (tiny) target array so in-kernel pl.ds slicing of the last tile
    # never reads past the allocation; padded rows are masked in the kernel.
    b_pad = num_tiles * tile_b
    if b_pad != batch:
        target = jnp.pad(target, ((0, b_pad - batch), (0, 0)))

    kernel = functools.partial(
        _label_smoothing_kernel,
        confidence=confidence,
        off_value=off_value,
        batch=batch,
        tile_b=tile_b,
    )

    cost = pl.CostEstimate(
        flops=6 * batch * classes,
        transcendentals=batch * classes + batch,          # exp over tile + log per row
        bytes_accessed=batch * classes * pred.dtype.itemsize + b_pad * 4 + batch * 4,
    )

    per_row = pl.pallas_call(
        kernel,
        out_shape=jax.ShapeDtypeStruct((batch, 1), jnp.float32),
        grid_spec=pltpu.PrefetchScalarGridSpec(
            num_scalar_prefetch=0,
            grid=(num_tiles,),
            in_specs=[
                # target: one untiled block (fetched once, resident), sliced in-kernel.
                pl.BlockSpec((b_pad, 1), lambda i: (0, 0)),
                # pred: streamed batch tiles, auto double-buffered.
                pl.BlockSpec((tile_b, classes), lambda i: (i, 0)),
            ],
            out_specs=pl.BlockSpec((tile_b, 1), lambda i: (i, 0)),
        ),
        compiler_params=pltpu.CompilerParams(
            # Independent per-row output blocks -> batch tiles shard across
            # TensorCores on v7x; neutral on single-TC v5e/v6e.
            dimension_semantics=("parallel",),
            vmem_limit_bytes=vmem_limit,
        ),
        cost_estimate=cost,
    )(target, pred)

    # Final reduction + mean in plain JAX (tiny: B float32 values).
    return jnp.sum(per_row) * jnp.float32(1.0 / batch)


def _reference(pred, target, classes, smoothing):
    # Pure-JAX reference mirroring the PyTorch module.
    logp = jax.nn.log_softmax(pred.astype(jnp.float32), axis=-1)
    confidence = 1.0 - smoothing
    off_value = smoothing / (classes - 1)
    onehot = jax.nn.one_hot(target.reshape(-1), classes, dtype=jnp.float32)
    true_dist = onehot * confidence + (1.0 - onehot) * off_value
    return jnp.mean(jnp.sum(-true_dist * logp, axis=-1))


if __name__ == "__main__":
    key = jax.random.PRNGKey(0)
    smoothing = 0.1

    # Case 1: shapes matching the module's typical FERVT use (small logits batch).
    B, C = 8, 10
    k1, k2, k3, k4, k5, k6 = jax.random.split(key, 6)
    pred = jax.random.normal(k1, (B, C), dtype=jnp.float32)
    target = jax.random.randint(k2, (B,), 0, C, dtype=jnp.int32)

    loss = jax.block_until_ready(
        label_smoothing_loss(pred, target, classes=C, smoothing=smoothing))
    ref = _reference(pred, target, C, smoothing)
    assert jnp.allclose(loss, ref, atol=1e-5, rtol=1e-5), (loss, ref)

    # Case 2: exercise the batch-tiled grid, target padding and remainder-row
    # masking (grid of 3 tiles of 8 rows; last tile has 4 padded rows).
    B2, C2, TILE = 20, 10, 8
    pred2 = jax.random.normal(k3, (B2, C2), dtype=jnp.float32)
    target2 = jax.random.randint(k4, (B2,), 0, C2, dtype=jnp.int32)

    loss2 = jax.block_until_ready(
        label_smoothing_loss(pred2, target2, classes=C2, smoothing=smoothing,
                             tile_b=TILE))
    ref2 = _reference(pred2, target2, C2, smoothing)
    assert jnp.allclose(loss2, ref2, atol=1e-5, rtol=1e-5), (loss2, ref2)

    # Case 3: bf16 logits with 16-row tiles (sublane-packed path) and 2 tiles.
    B3, C3, TILE3 = 32, 256, 16
    pred3 = jax.random.normal(k5, (B3, C3), dtype=jnp.float32).astype(jnp.bfloat16)
    target3 = jax.random.randint(k6, (B3,), 0, C3, dtype=jnp.int32)

    loss3 = jax.block_until_ready(
        label_smoothing_loss(pred3, target3, classes=C3, smoothing=smoothing,
                             tile_b=TILE3))
    ref3 = _reference(pred3, target3, C3, smoothing)
    assert jnp.allclose(loss3, ref3, atol=1e-4, rtol=1e-4), (loss3, ref3)

    print("KERNEL_OK")
</pallas_src>

<mosaic_0001>
module attributes {stable_mosaic.version = 11 : i64} {
  func.func @_label_smoothing_kernel(%arg0: i32, %arg1: memref<8x1xi32, #tpu.memory_space<vmem>>, %arg2: memref<8x10xf32, #tpu.memory_space<vmem>>, %arg3: memref<8x1xf32, #tpu.memory_space<vmem>>) attributes {dimension_semantics = [#tpu.dimension_semantics<parallel>], iteration_bounds = array<i64: 1>, scalar_prefetch = 0 : i64, scratch_operands = 0 : i64, tpu.core_type = #tpu.core_type<tc>, window_params = [{pipeline_mode = #tpu.pipeline_mode<synchronous>, transform_indices = @transform_0, window_bounds = array<i64: 8, 1>}, {transform_indices = @transform_1, window_bounds = array<i64: 8, 10>}, {transform_indices = @transform_2, window_bounds = array<i64: 8, 1>}]} {
    %c0 = arith.constant 0 : index
    %c0_0 = arith.constant 0 : index
    %0 = vector.load %arg2[%c0, %c0_0] : memref<8x10xf32, #tpu.memory_space<vmem>>, vector<8x10xf32>
    %cst = arith.constant dense<0xFF800000> : vector<8xf32>
    %1 = vector.multi_reduction <maximumf>, %0, %cst [1] : vector<8x10xf32> to vector<8xf32>
    %2 = vector.shape_cast %1 : vector<8xf32> to vector<8x1xf32>
    %cst_1 = arith.constant dense<0.000000e+00> : vector<8xf32>
    %3 = vector.multi_reduction <add>, %0, %cst_1 [1] : vector<8x10xf32> to vector<8xf32>
    %4 = vector.shape_cast %3 : vector<8xf32> to vector<8x1xf32>
    %5 = vector.broadcast %2 : vector<8x1xf32> to vector<8x10xf32>
    %6 = arith.subf %0, %5 : vector<8x10xf32>
    %7 = math.exp %6 : vector<8x10xf32>
    %cst_2 = arith.constant dense<0.000000e+00> : vector<8xf32>
    %8 = vector.multi_reduction <add>, %7, %cst_2 [1] : vector<8x10xf32> to vector<8xf32>
    %9 = vector.shape_cast %8 : vector<8xf32> to vector<8x1xf32>
    %10 = math.log %9 : vector<8x1xf32>
    %c8_i32 = arith.constant 8 : i32
    %11 = arith.muli %arg0, %c8_i32 : i32
    %12 = tpu.assume_multiple %11, 8 : i32
    %13 = arith.index_cast %12 : i32 to index
    %c0_3 = arith.constant 0 : index
    %14 = vector.load %arg1[%13, %c0_3] : memref<8x1xi32, #tpu.memory_space<vmem>>, vector<8x1xi32>
    %15 = tpu.iota {dimensions = array<i32: 1>} : vector<1x10xi32>
    %16 = vector.broadcast %15 : vector<1x10xi32> to vector<8x10xi32>
    %17 = vector.broadcast %14 : vector<8x1xi32> to vector<8x10xi32>
    %18 = arith.cmpi eq, %16, %17 : vector<8x10xi32>
    %cst_4 = arith.constant 0.000000e+00 : f32
    %19 = vector.broadcast %cst_4 : f32 to vector<8x10xf32>
    %20 = arith.select %18, %0, %19 : vector<8x10xi1>, vector<8x10xf32>
    %cst_5 = arith.constant dense<0.000000e+00> : vector<8xf32>
    %21 = vector.multi_reduction <add>, %20, %cst_5 [1] : vector<8x10xf32> to vector<8xf32>
    %22 = vector.shape_cast %21 : vector<8xf32> to vector<8x1xf32>
    %23 = arith.addf %2, %10 : vector<8x1xf32>
    %cst_6 = arith.constant 1.000000e+01 : f32
    %24 = vector.broadcast %cst_6 : f32 to vector<8x1xf32>
    %25 = arith.mulf %24, %23 : vector<8x1xf32>
    %26 = arith.subf %4, %25 : vector<8x1xf32>
    %27 = arith.subf %22, %2 : vector<8x1xf32>
    %28 = arith.subf %27, %10 : vector<8x1xf32>
    %cst_7 = arith.constant 0.0111111114 : f32
    %29 = vector.broadcast %cst_7 : f32 to vector<8x1xf32>
    %30 = arith.mulf %29, %26 : vector<8x1xf32>
    %cst_8 = arith.constant 0.888888895 : f32
    %31 = vector.broadcast %cst_8 : f32 to vector<8x1xf32>
    %32 = arith.mulf %31, %28 : vector<8x1xf32>
    %33 = arith.addf %30, %32 : vector<8x1xf32>
    %cst_9 = arith.constant 0.000000e+00 : f32
    %34 = vector.broadcast %cst_9 : f32 to vector<8x1xf32>
    %35 = arith.subf %34, %33 : vector<8x1xf32>
    %36 = tpu.iota {dimensions = array<i32: 0>} : vector<8x1xi32>
    %c8_i32_10 = arith.constant 8 : i32
    %37 = arith.muli %arg0, %c8_i32_10 : i32
    %38 = vector.broadcast %37 : i32 to vector<8x1xi32>
    %39 = arith.addi %38, %36 : vector<8x1xi32>
    %c8_i32_11 = arith.constant 8 : i32
    %40 = vector.broadcast %c8_i32_11 : i32 to vector<8x1xi32>
    %41 = arith.cmpi slt, %39, %40 : vector<8x1xi32>
    %cst_12 = arith.constant 0.000000e+00 : f32
    %42 = vector.broadcast %cst_12 : f32 to vector<8x1xf32>
    %43 = arith.select %41, %35, %42 : vector<8x1xi1>, vector<8x1xf32>
    %c0_13 = arith.constant 0 : index
    %c0_14 = arith.constant 0 : index
    %44 = vector.load %arg3[%c0_13, %c0_14] : memref<8x1xf32, #tpu.memory_space<vmem>>, vector<8x1xf32>
    tpu.vector_store %arg3[%c0_13, %c0_14], %43 {strides = array<i32>} : memref<8x1xf32, #tpu.memory_space<vmem>>, vector<8x1xf32>,
    return
  }
  func.func @transform_0(%arg0: i32) -> (i32, i32) {
    %c0_i32 = arith.constant 0 : i32
    %c0_i32_0 = arith.constant 0 : i32
    %c0_i32_1 = arith.constant 0 : i32
    return %c0_i32, %c0_i32_0 : i32, i32
  }
  func.func @transform_1(%arg0: i32) -> (i32, i32) {
    %c0_i32 = arith.constant 0 : i32
    %c0_i32_0 = arith.constant 0 : i32
    return %arg0, %c0_i32 : i32, i32
  }
  func.func @transform_2(%arg0: i32) -> (i32, i32) {
    %c0_i32 = arith.constant 0 : i32
    %c0_i32_0 = arith.constant 0 : i32
    return %arg0, %c0_i32 : i32, i32
  }
}

</mosaic_0001>

<bundles_post_ra>
// kernel: tpu_custom_call.1
= control target key start
LH: loop header
LB: loop body
LE: loop exit
PB: predicated region body
PF: predicated region fallthrough
CT: control target
= control target key end

     0   :  { %7 = vsyncpa [#allocation3], 0  ;;  %s238_s0 = inlined_call_operand.hbm [shape: s32[8,1], index: 0, kind: input, shape index: {}]   ;;  %s239_s1 = inlined_call_operand.hbm [shape: f32[8,10], index: 1, kind: input, shape index: {}]   ;;  %s240_s2 = inlined_call_operand.hbm [shape: f32[8,1], index: 2, kind: output, shape index: {}]  }
   0x1   :  { %8 = vsyncpa [#allocation6], 0 }
   0x2   :  { %9 = vsyncpa [#allocation4], 0  ;;  %s179_s9 = smov [#allocation2]   ;;  %s180_s11 = smov [#allocation5]  }
   0x3   :  { %s16_s10 = sshll.u32 %s179_s9, 4  ;;  %s26_s12 = sshll.u32 %s180_s11, 4  ;;  %s17_s10 = int_to_ptr.vmem [resolvable:$true] %s16_s10  ;;  %s27_s12 = int_to_ptr.vmem [resolvable:$true] %s26_s12 }
   0x4   :  { %s107_s15 = scalar_lea.hbm %s238_s0, 128 }
   0x5   :  { %p108_p0 = scmp.ne.s32.totalorder %s238_s0, %s107_s15  ;;  %p111_p1 = scmp.lt.u32.totalorder %s107_s15, %s238_s0 }
   0x7   :  { %p113_p2 = pnand %p111_p1, %p108_p0 }
   0x9   :  { %116 = shalt.err (!%p113_p2)
}
   0xa   :  { %s117_s20 = scalar_lea.vmem %s17_s10, 128  ;;  %p122_p4 = scmp.lt.s32.totalorder %s17_s10, %s17_s10 }
   0xb   :  { %p118_p3 = scmp.ne.s32.totalorder %s17_s10, %s117_s20  ;;  %p123_p5 = scmp.lt.s32.totalorder %s117_s20, %s117_s20 }
   0xd   :  { %p124_p6 = por %p123_p5, %p122_p4 }
   0xf   :  { %p125_p7 = pnand %p124_p6, %p118_p3 }
  0x11   :  { %128 = shalt.err (!%p125_p7)
}
  0x12   :  { %19 = dma.hbm_to_vmem [thread:$0]  %s238_s0, 128, %s17_s10, [#allocation3]  }
  0x13   :  { %s129_s25 = scalar_lea.hbm %s239_s1, 128 }
  0x14   :  { %p130_p8 = scmp.ne.s32.totalorder %s239_s1, %s129_s25  ;;  %p133_p9 = scmp.lt.u32.totalorder %s129_s25, %s239_s1 }
  0x16   :  { %p135_p10 = pnand %p133_p9, %p130_p8 }
  0x18   :  { %138 = shalt.err (!%p135_p10)
}
  0x19   :  { %s139_s30 = scalar_lea.vmem %s27_s12, 128  ;;  %p144_p12 = scmp.lt.s32.totalorder %s27_s12, %s27_s12 }
  0x1a   :  { %p140_p11 = scmp.ne.s32.totalorder %s27_s12, %s139_s30  ;;  %p145_p13 = scmp.lt.s32.totalorder %s139_s30, %s139_s30 }
  0x1c   :  { %p146_p0 = por %p145_p13, %p144_p12 }
  0x1e   :  { %p147_p1 = pnand %p146_p0, %p140_p11 }
  0x20   :  { %150 = shalt.err (!%p147_p1)
}
  0x21   :  { %29 = dma.hbm_to_vmem [thread:$0]  %s239_s1, 128, %s27_s12, [#allocation6]  }
  0x22   :  { %173 = dma.done.wait [#allocation3], 128  }
  0x23   :  { %174 = vsyncadd [#allocation3], 4294967168 }
  0x24   :  { %175 = dma.done.wait [#allocation6], 128  }
  0x25   :  { %176 = vsyncadd [#allocation6], 4294967168  ;;  %v181_v0 = vmov 0   ;;  %vm37_vm0 = vcmask 80896   ;;  %v36_v1 = vld [vmem:[#allocation5] sm:$0xff]  ;;  %v54_v3 = vld [vmem:[#allocation2] sm:$0xff]  ;;  %v55_v7 = vlaneseq }
  0x26   :  { %102 = vset.pattern.permute.xlu0 %v181_v0  ;;  %v38_v2 = vsel %vm37_vm0, %v36_v1, -inf  ;;  %v41_v14 = vsel %vm37_vm0, %v36_v1, 0.0  ;;  %s182_s1 = smov [#allocation7]   ;;  %vm80_vm2 = vcmask 7168  }
  0x27   :  { %39 = vmax.xlane.f32.xlu0 %v38_v2  ;;  %v56_v8 = vand.u32 127, %v55_v7  ;;  %s88_s4 = sshll.u32 %s182_s1, 4  ;;  %s89_s4 = int_to_ptr.vmem [resolvable:$true] %s88_s4 }
  0x28   :  { %s151_s5 = scalar_lea.vmem %s89_s4, 128  ;;  %p156_p3 = scmp.lt.s32.totalorder %s89_s4, %s89_s4 }
  0x29   :  { %p152_p2 = scmp.ne.s32.totalorder %s89_s4, %s151_s5  ;;  %p157_p4 = scmp.lt.s32.totalorder %s151_s5, %s151_s5 }
  0x2b   :  { %p158_p5 = por %p157_p4, %p156_p3 }
  0x2d   :  { %p159_p6 = pnand %p158_p5, %p152_p2 }
  0x3d   :  { %58 = vperm.xlu0 %102, %v54_v3  }
  0xb4   :  { %v40_v4 = vpop.xlane.xlu0 %39 }
  0xb5   :  { %v44_v5 = vsub.f32 %v36_v1, %v40_v4 }
  0xb7   :  { %v45_v6 = vmul.f32 1.442695, %v44_v5 }
  0xb9   :  { %103 = vpow2.f32 %v45_v6 }
  0xbc   :  { %v59_v9 = vpop.permute.xlu0 %58 }
  0xbd   :  { %vm60_vm1 = vcmp.eq.s32.totalorder %v56_v8, %v59_v9 }
  0xbe   :  { %v61_v11 = vsel %vm60_vm1, %v36_v1, 0.0 }
  0xbf   :  { %v62_v13 = vsel %vm37_vm0, %v61_v11, 0.0 }
  0xc3   :  { %v104_v10 = vpop.eup %103 }
  0xc4   :  { %v47_v12 = vsel %vm37_vm0, %v104_v10, 0.0 }
  0xc5   :  { %48 = vadd.xlane.f32.xlu1 %v47_v12 }
  0xc9   :  { %63 = vadd.xlane.f32.xlu1 %v62_v13 }
  0xcd   :  { %42 = vadd.xlane.f32.xlu1 %v41_v14 }
 0x152   :  { %v49_v15 = vpop.xlane.xlu1 %48 }
 0x153   :  { %105 = vlog2.f32 %v49_v15 }
 0x156   :  { %v64_v17 = vpop.xlane.xlu1 %63 }
 0x157   :  { %v68_v19 = vsub.f32 %v64_v17, %v40_v4 }
 0x15a   :  { %v43_v21 = vpop.xlane.xlu1 %42 }
 0x15d   :  { %v106_v16 = vpop.eup %105 }
 0x15e   :  { %v51_v18 = vmul.f32 0.6931472, %v106_v16 }
 0x160   :  { %v65_v20 = vadd.f32 %v51_v18, %v40_v4  ;;  %v69_v22 = vsub.f32 %v68_v19, %v51_v18 }
 0x162   :  { %v66_v23 = vmul.f32 10.0, %v65_v20  ;;  %v71_v25 = vmul.f32 0.8888889, %v69_v22 }
 0x164   :  { %v67_v24 = vsub.f32 %v43_v21, %v66_v23 }
 0x166   :  { %v70_v26 = vmul.f32 0.011111111, %v67_v24 }
 0x168   :  { %v72_v27 = vadd.f32 %v71_v25, %v70_v26 }
 0x16a   :  { %v73_v28 = vsub.f32 0.0, %v72_v27 }
 0x16c   :  { %81 = vst.msk [vmem:[#allocation7] sm:$0xff] %vm80_vm2, %v73_v28 }
 0x16d   :  { %162 = shalt.err (!%p159_p6)
}
 0x16e   :  { %s163_s8 = scalar_lea.hbm %s240_s2, 128 }
 0x16f   :  { %p164_p7 = scmp.ne.s32.totalorder %s240_s2, %s163_s8  ;;  %p167_p8 = scmp.lt.u32.totalorder %s163_s8, %s240_s2 }
 0x171   :  { %p169_p9 = pnand %p167_p8, %p164_p7 }
 0x173   :  { %172 = shalt.err (!%p169_p9)
}
 0x174   :  { %91 = dma.vmem_to_hbm [thread:$0]  %s89_s4, 128, %s240_s2, [#allocation4]  }
 0x175   :  { %177 = dma.done.wait [#allocation4], 128  }
 0x176   :  { %178 = vsyncadd [#allocation4], 4294967168 }
 0x177   :  { %95 = vsyncpa [#allocation3], 1 }
 0x178   :  { %96 = vsyncpa [#allocation6], 1 }
 0x179   :  { %97 = vsyncpa [#allocation4], 1 }

</bundles_post_ra>
